<compile_context>
chip_gen: v5e
topology: v5e:2x2
jax: 0.10.0
libtpu: 0.0.40
codegen_flags: <defaults>
</compile_context>

<pallas_src>
import functools

import jax
import jax.numpy as jnp
from jax.experimental import pallas as pl
from jax.experimental.pallas import tpu as pltpu

NEG_BIG = -3.0e38
BN_EPS = 1e-5


# ----------------------------------------------------------------------------
# compiler params
# ----------------------------------------------------------------------------
def _vmem_limit_bytes():
    # v5e/v6e: 128 MiB VMEM per core, v7x: 64 MiB -> budget ~3/4 of capacity.
    try:
        cap = pltpu.get_tpu_info().vmem_capacity_bytes
        return int(min(cap * 3 // 4, 96 * 1024 * 1024))
    except Exception:
        return 48 * 1024 * 1024


def _cparams():
    return pltpu.CompilerParams(dimension_semantics=("parallel",),
                                vmem_limit_bytes=_vmem_limit_bytes())


# ----------------------------------------------------------------------------
# in-kernel im2col helpers (static shapes; single-pass tap assembly)
# ----------------------------------------------------------------------------
def _fill_taps_ref(tap_ref, src_ref, *, cin, t_src, t_out, pad=4, k_size=9):
    """Im2col for a stride-1 1xK conv: write the K shifted, zero-padded copies
    of src_ref (t_src, cin) into lane slots [k*cin, (k+1)*cin) of
    tap_ref[:t_out, :K*cin] in one pass (no padded copy / value concat).
    Only the pad border rows are explicitly zero-filled."""
    kc = k_size * cin
    dt = tap_ref.dtype
    top = min(pad, t_out)
    if top > 0:
        tap_ref[0:top, 0:kc] = jnp.zeros((top, kc), dt)
    bot = k_size - 1 - pad
    blo = max(t_src - bot, top)
    if blo < t_out:
        tap_ref[blo:t_out, 0:kc] = jnp.zeros((t_out - blo, kc), dt)
    for k in range(k_size):
        lo = max(0, pad - k)
        hi = min(t_out, t_src + pad - k)
        if hi > lo:
            tap_ref[lo:hi, k * cin:(k + 1) * cin] = (
                src_ref[lo - pad + k:hi - pad + k, :].astype(dt))


def _fill_taps_stride2(tap_ref, x_ref, *, cin, t_in, t_out):
    """Im2col for the stride-2 1x9 conv (pad 4): extract the even/odd time
    phases of x once (2 strided loads of the UNPADDED input), zero-extend them
    in VMEM, and write the 9 taps as contiguous shifted slices.  Returns the
    even phase pe so the caller can reuse it for the 1x1 stride-2 downsample
    (x[::2] == pe[2:t_out+2])."""
    ne = (t_in + 1) // 2
    no = t_in // 2
    dt = x_ref.dtype
    z2 = jnp.zeros((2, cin), dt)
    # pe[i] = x_pad4[2i], po[i] = x_pad4[2i+1]  (x_pad4 = zero pad of 4 rows)
    pe = jnp.concatenate(
        [z2, x_ref[pl.ds(0, ne, stride=2), :],
         jnp.zeros((t_out + 2 - ne, cin), dt)], axis=0)
    po = jnp.concatenate(
        [z2, x_ref[pl.ds(1, no, stride=2), :],
         jnp.zeros((t_out + 2 - no, cin), dt)], axis=0)
    for k in range(9):
        src = pe if k % 2 == 0 else po
        q = k // 2
        tap_ref[0:t_out, k * cin:(k + 1) * cin] = src[q:q + t_out, :]
    return pe


# ----------------------------------------------------------------------------
# Pallas kernels
# ----------------------------------------------------------------------------
def _init_stage_kernel(x_ref, w_ref, s_ref, b_ref, out_ref, y_ref, *, t1, t2):
    """AudInitStage: Conv2d(1,32,(1,49),s(1,4),p(0,24)) + BN + ReLU +
    MaxPool2d((1,9),s(1,4),p(0,4)), fully fused.

    x_ref: (t1+12, 4) f32 -- zero-padded raw audio in a stride-4 phase layout,
           row r holds padded samples [4r, 4r+3]; conv output row i therefore
           needs rows [i, i+12], i.e. 13 CONTIGUOUS taps (in-kernel im2col).
    w_ref: (52, cout) f32 -- the 49-tap weight zero-padded to 13*4 rows.
    """
    taps = [x_ref[q:q + t1, :] for q in range(13)]
    xw = jnp.concatenate(taps, axis=-1)                       # (t1, 52) f32
    y = jnp.dot(xw, w_ref[...], preferred_element_type=jnp.float32)
    y = jnp.maximum(y * s_ref[...] + b_ref[...], 0.0)         # BN + ReLU, f32
    c = y.shape[-1]

    # MaxPool k9 s4 p4: write the conv map ONCE (only pad border rows get
    # NEG_BIG), then 4 pool-phase strided loads + contiguous shifted maxes.
    nrows = 4 * (t2 + 2)
    y_ref[0:4, :] = jnp.full((4, c), NEG_BIG, jnp.float32)
    y_ref[4:4 + t1, :] = y
    y_ref[4 + t1:nrows, :] = jnp.full((nrows - t1 - 4, c), NEG_BIG, jnp.float32)
    ph0 = y_ref[pl.ds(0, t2 + 2, stride=4), :]
    m = ph0
    for p in range(1, 4):
        m = jnp.maximum(m, y_ref[pl.ds(p, t2 + 2, stride=4), :])
    # window k=0..8:  max over phases of rows j, j+1, plus phase-0 of row j+2
    out = jnp.maximum(jnp.maximum(m[0:t2], m[1:t2 + 1]), ph0[2:t2 + 2])
    out_ref[...] = out.astype(out_ref.dtype)


def _res_block_kernel(*refs, stride, t_in, t_out, cin, cout, has_down):
    """Fused BiModalBasicBlock:
         h  = relu(bn1(conv1x9_s(x)))
         y  = bn2(conv1x9_1(h))
         id = bn_d(conv1x1_s(x))  (if downsample)  else  x
         out = relu(y + id)
       The intermediate h, both im2col tap matrices and the downsample branch
       stay in VMEM; each conv is a single MXU dot over the full 9*C depth."""
    if has_down:
        (x_ref, w1_ref, s1_ref, b1_ref, w2_ref, s2_ref, b2_ref,
         wd_ref, sd_ref, bd_ref, out_ref, tap_ref, h_ref) = refs
    else:
        (x_ref, w1_ref, s1_ref, b1_ref, w2_ref, s2_ref, b2_ref,
         out_ref, tap_ref, h_ref) = refs

    # ---- conv1 (1x9, stride, pad 4) + BN + ReLU -----------------------------
    if stride == 1:
        _fill_taps_ref(tap_ref, x_ref, cin=cin, t_src=t_in, t_out=t_out)
        pe = None
    else:
        pe = _fill_taps_stride2(tap_ref, x_ref, cin=cin, t_in=t_in, t_out=t_out)
    a1 = jnp.dot(tap_ref[:, 0:9 * cin], w1_ref[...],
                 preferred_element_type=jnp.float32)
    h = jnp.maximum(a1 * s1_ref[...] + b1_ref[...], 0.0)      # f32 math
    h_ref[...] = h.astype(h_ref.dtype)                        # bf16 for MXU

    # ---- conv2 (1x9, stride 1, pad 4) + BN ----------------------------------
    _fill_taps_ref(tap_ref, h_ref, cin=cout, t_src=t_out, t_out=t_out)
    a2 = jnp.dot(tap_ref[:, 0:9 * cout], w2_ref[...],
                 preferred_element_type=jnp.float32)
    y = a2 * s2_ref[...] + b2_ref[...]

    # ---- identity / 1x1 stride-2 downsample, residual add, ReLU -------------
    if has_down:
        xd = x_ref[...] if stride == 1 else pe[2:t_out + 2, :]
        ident = jnp.dot(xd, wd_ref[...], preferred_element_type=jnp.float32)
        ident = ident * sd_ref[...] + bd_ref[...]
    else:
        ident = x_ref[...].astype(jnp.float32)
    out_ref[...] = jnp.maximum(y + ident, 0.0).astype(out_ref.dtype)


def _head_kernel(x_ref, w_ref, b_ref, out_ref, *, inv_t):
    """AdaptiveAvgPool2d((1,1)) + flatten + Linear(256,5) + sigmoid, one
    sample per grid step.  The time mean is a ones-vector MXU matmul with f32
    accumulation (no f32 copy of the whole activation)."""
    ones = jnp.ones((1, x_ref.shape[0]), x_ref.dtype)
    s = jnp.dot(ones, x_ref[...], preferred_element_type=jnp.float32)  # (1, C)
    m = s * inv_t
    y = jnp.dot(m, w_ref[...], preferred_element_type=jnp.float32) + b_ref[...]
    out_ref[...] = 0.5 * (jnp.tanh(0.5 * y) + 1.0)             # stable sigmoid


# ----------------------------------------------------------------------------
# wrappers
# ----------------------------------------------------------------------------
def init_stage(x_raw, p):
    """x_raw: (N, T) f32 raw audio -> (N, ~T//16, 32) bf16."""
    n, t = x_raw.shape
    k0, s0, pad0 = 49, 4, 24
    t1 = (t + 2 * pad0 - k0) // s0 + 1
    t2 = (t1 + 2 * 4 - 9) // 4 + 1
    cout = p["w"].shape[-1]
    tp4 = t1 + 12
    # Zero-pad (conv padding + tail) and view as a stride-4 phase layout.
    # No data expansion: 4*tp4 = 4*t1 + 48 samples total, reshape only.
    xp = jnp.pad(x_raw, ((0, 0), (pad0, 4 * tp4 - t - pad0))).reshape(n, tp4, 4)
    kernel = functools.partial(_init_stage_kernel, t1=t1, t2=t2)
    return pl.pallas_call(
        kernel,
        out_shape=jax.ShapeDtypeStruct((n, t2, cout), jnp.bfloat16),
        grid=(n,),
        in_specs=[
            pl.BlockSpec((None, tp4, 4), lambda i: (i, 0, 0)),
            pl.BlockSpec((52, cout), lambda i: (0, 0)),
            pl.BlockSpec((1, cout), lambda i: (0, 0)),
            pl.BlockSpec((1, cout), lambda i: (0, 0)),
        ],
        out_specs=pl.BlockSpec((None, t2, cout), lambda i: (i, 0, 0)),
        scratch_shapes=[pltpu.VMEM((4 * (t2 + 2), cout), jnp.float32)],
        compiler_params=_cparams(),
    )(xp, p["w"], p["scale"], p["bias"])


def residual_block(x, blk):
    """x: (N, T, Cin) bf16 -> (N, T_out, Cout) bf16, one fused pallas_call."""
    stride = blk["stride"]
    n, t_in, cin = x.shape
    cout = blk["s1"].shape[-1]
    t_out = (t_in + 2 * 4 - 9) // stride + 1
    has_down = "wd" in blk
    assert stride == 1 or has_down

    args = [x, blk["w1"], blk["s1"], blk["b1"], blk["w2"], blk["s2"], blk["b2"]]
    in_specs = [
        pl.BlockSpec((None, t_in, cin), lambda i: (i, 0, 0)),
        pl.BlockSpec(blk["w1"].shape, lambda i: (0, 0)),
        pl.BlockSpec((1, cout), lambda i: (0, 0)),
        pl.BlockSpec((1, cout), lambda i: (0, 0)),
        pl.BlockSpec(blk["w2"].shape, lambda i: (0, 0)),
        pl.BlockSpec((1, cout), lambda i: (0, 0)),
        pl.BlockSpec((1, cout), lambda i: (0, 0)),
    ]
    if has_down:
        args += [blk["wd"], blk["sd"], blk["bd"]]
        in_specs += [
            pl.BlockSpec(blk["wd"].shape, lambda i: (0, 0)),
            pl.BlockSpec((1, cout), lambda i: (0, 0)),
            pl.BlockSpec((1, cout), lambda i: (0, 0)),
        ]
    kernel = functools.partial(_res_block_kernel, stride=stride, t_in=t_in,
                               t_out=t_out, cin=cin, cout=cout,
                               has_down=has_down)
    tap_w = 9 * max(cin, cout)
    return pl.pallas_call(
        kernel,
        out_shape=jax.ShapeDtypeStruct((n, t_out, cout), jnp.bfloat16),
        grid=(n,),
        in_specs=in_specs,
        out_specs=pl.BlockSpec((None, t_out, cout), lambda i: (i, 0, 0)),
        scratch_shapes=[pltpu.VMEM((t_out, tap_w), jnp.bfloat16),
                        pltpu.VMEM((t_out, cout), jnp.bfloat16)],
        compiler_params=_cparams(),
    )(*args)


def head_pool_linear_sigmoid(x, w_t, b):
    """x: (N, T, 256) bf16, w_t: (256, 5) f32, b: (1, 5) f32 -> (N, 5) f32."""
    n, t, c = x.shape
    nout = w_t.shape[1]
    kernel = functools.partial(_head_kernel, inv_t=1.0 / float(t))
    out = pl.pallas_call(
        kernel,
        out_shape=jax.ShapeDtypeStruct((n, 1, nout), jnp.float32),
        grid=(n,),
        in_specs=[
            pl.BlockSpec((None, t, c), lambda i: (i, 0, 0)),
            pl.BlockSpec((c, nout), lambda i: (0, 0)),
            pl.BlockSpec((1, nout), lambda i: (0, 0)),
        ],
        out_specs=pl.BlockSpec((None, 1, nout), lambda i: (i, 0, 0)),
        compiler_params=_cparams(),
    )(x, w_t, b)
    return out.reshape(n, nout)


# ----------------------------------------------------------------------------
# parameters (deterministic, synthetic) and forward pass
# ----------------------------------------------------------------------------
def _fold_bn(gamma, beta, mean, var):
    scale = gamma / jnp.sqrt(var + BN_EPS)
    bias = beta - mean * scale
    return (scale.reshape(1, -1).astype(jnp.float32),
            bias.reshape(1, -1).astype(jnp.float32))


def init_params(key):
    counter = [0]

    def nk():
        counter[0] += 1
        return jax.random.fold_in(key, counter[0])

    def conv_w(k_size, cin, cout):
        fan_in = float(cin * k_size)
        w = jax.random.normal(nk(), (k_size, cin, cout), jnp.float32) / jnp.sqrt(fan_in)
        # stored pre-flattened (K*Cin, Cout), bf16, matching the tap lane order
        return w.reshape(k_size * cin, cout).astype(jnp.bfloat16)

    def bn(c):
        gamma = 1.0 + 0.1 * jax.random.normal(nk(), (c,), jnp.float32)
        beta = 0.1 * jax.random.normal(nk(), (c,), jnp.float32)
        mean = 0.1 * jax.random.normal(nk(), (c,), jnp.float32)
        var = 0.5 + jnp.abs(jax.random.normal(nk(), (c,), jnp.float32))
        return _fold_bn(gamma, beta, mean, var)

    channels = [32, 64, 128, 256]
    layers = [2, 2, 2, 2]
    params = {}
    # init conv (Cin=1, 49 taps) kept in f32; zero-padded to 52 rows so the
    # in-kernel 13x4-phase im2col maps 1:1 onto the weight rows.
    w49 = jax.random.normal(nk(), (49, 1, channels[0]), jnp.float32) / jnp.sqrt(49.0)
    w_init = jnp.concatenate(
        [w49.reshape(49, channels[0]), jnp.zeros((3, channels[0]), jnp.float32)], axis=0)
    s0, b0 = bn(channels[0])
    params["init"] = {"w": w_init, "scale": s0, "bias": b0}

    blocks = []
    cin = channels[0]
    for li, (cout, nblk) in enumerate(zip(channels, layers)):
        layer = []
        for bi in range(nblk):
            stride = 2 if (li > 0 and bi == 0) else 1
            in_ch = cin if bi == 0 else cout
            blk = {"stride": stride}
            blk["w1"] = conv_w(9, in_ch, cout)
            blk["s1"], blk["b1"] = bn(cout)
            blk["w2"] = conv_w(9, cout, cout)
            blk["s2"], blk["b2"] = bn(cout)
            if stride != 1 or in_ch != cout:
                blk["wd"] = conv_w(1, in_ch, cout)            # aud_conv1x1 downsample
                blk["sd"], blk["bd"] = bn(cout)
            layer.append(blk)
        blocks.append(layer)
        cin = cout
    params["blocks"] = blocks

    # nn.Linear(256, 5): y = x @ W.T + b ; stored pre-transposed as (256, 5)
    params["lin_w_t"] = 0.05 * jax.random.normal(nk(), (channels[-1], 5), jnp.float32)
    params["lin_b"] = 0.05 * jax.random.normal(nk(), (1, 5), jnp.float32)
    return params


def audio_resnet18_forward(aud_input, params):
    # aud_input: (N, 1, 1, T) NCHW  ->  (N, T) raw audio
    x_raw = aud_input[:, 0, 0, :].astype(jnp.float32)

    # AudInitStage: conv1x49 s4 + BN + ReLU + maxpool1x9 s4, fused
    x = init_stage(x_raw, params["init"])                     # (N, ~T/16, 32) bf16

    # 4 stages of BiModalBasicBlock (ResNet18: [2,2,2,2]), one kernel per block
    for layer in params["blocks"]:
        for blk in layer:
            x = residual_block(x, blk)

    # AdaptiveAvgPool2d((1,1)) + view(N,-1) + Linear(256,5) + sigmoid
    return head_pool_linear_sigmoid(x, params["lin_w_t"], params["lin_b"])


if __name__ == "__main__":
    key = jax.random.PRNGKey(0)
    params = init_params(jax.random.fold_in(key, 1))
    # small synthetic raw-audio input: batch=2, 1 channel, H=1, T=256 samples
    aud_input = jax.random.normal(jax.random.fold_in(key, 2), (2, 1, 1, 256),
                                  jnp.float32)
    out = jax.block_until_ready(audio_resnet18_forward(aud_input, params))
    assert out.shape == (2, 5), out.shape
    assert bool(jnp.all(jnp.isfinite(out)))
    assert bool(jnp.all((out >= 0.0) & (out <= 1.0)))         # post-sigmoid
    print("KERNEL_OK")
</pallas_src>

<mosaic_0001>
module attributes {stable_mosaic.version = 11 : i64} {
  func.func @_init_stage_kernel(%arg0: i32, %arg1: memref<1x76x4xf32, #tpu.memory_space<vmem>>, %arg2: memref<52x32xf32, #tpu.memory_space<vmem>>, %arg3: memref<1x32xf32, #tpu.memory_space<vmem>>, %arg4: memref<1x32xf32, #tpu.memory_space<vmem>>, %arg5: memref<1x16x32xbf16, #tpu.memory_space<vmem>>, %arg6: memref<72x32xf32, #tpu.memory_space<vmem>>) attributes {dimension_semantics = [#tpu.dimension_semantics<parallel>], iteration_bounds = array<i64: 2>, scalar_prefetch = 0 : i64, scratch_operands = 1 : i64, tpu.core_type = #tpu.core_type<tc>, window_params = [{transform_indices = @transform_0, window_bounds = array<i64: 1, 76, 4>}, {pipeline_mode = #tpu.pipeline_mode<synchronous>, transform_indices = @transform_1, window_bounds = array<i64: 52, 32>}, {pipeline_mode = #tpu.pipeline_mode<synchronous>, transform_indices = @transform_2, window_bounds = array<i64: 1, 32>}, {pipeline_mode = #tpu.pipeline_mode<synchronous>, transform_indices = @transform_3, window_bounds = array<i64: 1, 32>}, {transform_indices = @transform_4, window_bounds = array<i64: 1, 16, 32>}]} {
    %c0 = arith.constant 0 : index
    %c0_0 = arith.constant 0 : index
    %c0_1 = arith.constant 0 : index
    %0 = vector.load %arg1[%c0, %c0_0, %c0_1] : memref<1x76x4xf32, #tpu.memory_space<vmem>>, vector<1x64x4xf32>
    %1 = vector.shape_cast %0 : vector<1x64x4xf32> to vector<64x4xf32>
    %c0_2 = arith.constant 0 : index
    %c1 = arith.constant 1 : index
    %c0_3 = arith.constant 0 : index
    %2 = vector.load %arg1[%c0_2, %c1, %c0_3] : memref<1x76x4xf32, #tpu.memory_space<vmem>>, vector<1x64x4xf32>
    %3 = vector.shape_cast %2 : vector<1x64x4xf32> to vector<64x4xf32>
    %c0_4 = arith.constant 0 : index
    %c2 = arith.constant 2 : index
    %c0_5 = arith.constant 0 : index
    %4 = vector.load %arg1[%c0_4, %c2, %c0_5] : memref<1x76x4xf32, #tpu.memory_space<vmem>>, vector<1x64x4xf32>
    %5 = vector.shape_cast %4 : vector<1x64x4xf32> to vector<64x4xf32>
    %c0_6 = arith.constant 0 : index
    %c3 = arith.constant 3 : index
    %c0_7 = arith.constant 0 : index
    %6 = vector.load %arg1[%c0_6, %c3, %c0_7] : memref<1x76x4xf32, #tpu.memory_space<vmem>>, vector<1x64x4xf32>
    %7 = vector.shape_cast %6 : vector<1x64x4xf32> to vector<64x4xf32>
    %c0_8 = arith.constant 0 : index
    %c4 = arith.constant 4 : index
    %c0_9 = arith.constant 0 : index
    %8 = vector.load %arg1[%c0_8, %c4, %c0_9] : memref<1x76x4xf32, #tpu.memory_space<vmem>>, vector<1x64x4xf32>
    %9 = vector.shape_cast %8 : vector<1x64x4xf32> to vector<64x4xf32>
    %c0_10 = arith.constant 0 : index
    %c5 = arith.constant 5 : index
    %c0_11 = arith.constant 0 : index
    %10 = vector.load %arg1[%c0_10, %c5, %c0_11] : memref<1x76x4xf32, #tpu.memory_space<vmem>>, vector<1x64x4xf32>
    %11 = vector.shape_cast %10 : vector<1x64x4xf32> to vector<64x4xf32>
    %c0_12 = arith.constant 0 : index
    %c6 = arith.constant 6 : index
    %c0_13 = arith.constant 0 : index
    %12 = vector.load %arg1[%c0_12, %c6, %c0_13] : memref<1x76x4xf32, #tpu.memory_space<vmem>>, vector<1x64x4xf32>
    %13 = vector.shape_cast %12 : vector<1x64x4xf32> to vector<64x4xf32>
    %c0_14 = arith.constant 0 : index
    %c7 = arith.constant 7 : index
    %c0_15 = arith.constant 0 : index
    %14 = vector.load %arg1[%c0_14, %c7, %c0_15] : memref<1x76x4xf32, #tpu.memory_space<vmem>>, vector<1x64x4xf32>
    %15 = vector.shape_cast %14 : vector<1x64x4xf32> to vector<64x4xf32>
    %c0_16 = arith.constant 0 : index
    %c8 = arith.constant 8 : index
    %c0_17 = arith.constant 0 : index
    %16 = vector.load %arg1[%c0_16, %c8, %c0_17] : memref<1x76x4xf32, #tpu.memory_space<vmem>>, vector<1x64x4xf32>
    %17 = vector.shape_cast %16 : vector<1x64x4xf32> to vector<64x4xf32>
    %c0_18 = arith.constant 0 : index
    %c9 = arith.constant 9 : index
    %c0_19 = arith.constant 0 : index
    %18 = vector.load %arg1[%c0_18, %c9, %c0_19] : memref<1x76x4xf32, #tpu.memory_space<vmem>>, vector<1x64x4xf32>
    %19 = vector.shape_cast %18 : vector<1x64x4xf32> to vector<64x4xf32>
    %c0_20 = arith.constant 0 : index
    %c10 = arith.constant 10 : index
    %c0_21 = arith.constant 0 : index
    %20 = vector.load %arg1[%c0_20, %c10, %c0_21] : memref<1x76x4xf32, #tpu.memory_space<vmem>>, vector<1x64x4xf32>
    %21 = vector.shape_cast %20 : vector<1x64x4xf32> to vector<64x4xf32>
    %c0_22 = arith.constant 0 : index
    %c11 = arith.constant 11 : index
    %c0_23 = arith.constant 0 : index
    %22 = vector.load %arg1[%c0_22, %c11, %c0_23] : memref<1x76x4xf32, #tpu.memory_space<vmem>>, vector<1x64x4xf32>
    %23 = vector.shape_cast %22 : vector<1x64x4xf32> to vector<64x4xf32>
    %c0_24 = arith.constant 0 : index
    %c12 = arith.constant 12 : index
    %c0_25 = arith.constant 0 : index
    %24 = vector.load %arg1[%c0_24, %c12, %c0_25] : memref<1x76x4xf32, #tpu.memory_space<vmem>>, vector<1x64x4xf32>
    %25 = vector.shape_cast %24 : vector<1x64x4xf32> to vector<64x4xf32>
    %26 = tpu.concatenate %1, %3, %5, %7, %9, %11, %13, %15, %17, %19, %21, %23, %25 in 1 : vector<64x4xf32>, vector<64x4xf32>, vector<64x4xf32>, vector<64x4xf32>, vector<64x4xf32>, vector<64x4xf32>, vector<64x4xf32>, vector<64x4xf32>, vector<64x4xf32>, vector<64x4xf32>, vector<64x4xf32>, vector<64x4xf32>, vector<64x4xf32> -> vector<64x52xf32>
    %c0_26 = arith.constant 0 : index
    %c0_27 = arith.constant 0 : index
    %27 = vector.load %arg2[%c0_26, %c0_27] : memref<52x32xf32, #tpu.memory_space<vmem>>, vector<52x32xf32>
    %cst = arith.constant dense<0.000000e+00> : vector<64x32xf32>
    %28 = tpu.matmul %26, %27, %cst {dimension_numbers = #tpu.dot_dimension_numbers<[1], [0], [0], [1], [0, 0, 1, 1], [], []>} : vector<64x52xf32>, vector<52x32xf32>, vector<64x32xf32> -> vector<64x32xf32>
    %c0_28 = arith.constant 0 : index
    %c0_29 = arith.constant 0 : index
    %29 = vector.load %arg3[%c0_28, %c0_29] : memref<1x32xf32, #tpu.memory_space<vmem>>, vector<1x32xf32>
    %30 = vector.broadcast %29 : vector<1x32xf32> to vector<64x32xf32>
    %31 = arith.mulf %28, %30 : vector<64x32xf32>
    %c0_30 = arith.constant 0 : index
    %c0_31 = arith.constant 0 : index
    %32 = vector.load %arg4[%c0_30, %c0_31] : memref<1x32xf32, #tpu.memory_space<vmem>>, vector<1x32xf32>
    %33 = vector.broadcast %32 : vector<1x32xf32> to vector<64x32xf32>
    %34 = arith.addf %31, %33 : vector<64x32xf32>
    %cst_32 = arith.constant 0.000000e+00 : f32
    %35 = vector.broadcast %cst_32 : f32 to vector<64x32xf32>
    %36 = arith.maximumf %34, %35 : vector<64x32xf32>
    %cst_33 = arith.constant -3.000000e+38 : f32
    %37 = vector.broadcast %cst_33 : f32 to vector<4x32xf32>
    %c0_34 = arith.constant 0 : index
    %c0_35 = arith.constant 0 : index
    %38 = vector.load %arg6[%c0_34, %c0_35] : memref<72x32xf32, #tpu.memory_space<vmem>>, vector<4x32xf32>
    tpu.vector_store %arg6[%c0_34, %c0_35], %37 {strides = array<i32>} : memref<72x32xf32, #tpu.memory_space<vmem>>, vector<4x32xf32>,
    %c4_36 = arith.constant 4 : index
    %c0_37 = arith.constant 0 : index
    %39 = vector.load %arg6[%c4_36, %c0_37] : memref<72x32xf32, #tpu.memory_space<vmem>>, vector<64x32xf32>
    tpu.vector_store %arg6[%c4_36, %c0_37], %36 {strides = array<i32>} : memref<72x32xf32, #tpu.memory_space<vmem>>, vector<64x32xf32>,
    %cst_38 = arith.constant -3.000000e+38 : f32
    %40 = vector.broadcast %cst_38 : f32 to vector<4x32xf32>
    %c68 = arith.constant 68 : index
    %c0_39 = arith.constant 0 : index
    %41 = vector.load %arg6[%c68, %c0_39] : memref<72x32xf32, #tpu.memory_space<vmem>>, vector<4x32xf32>
    tpu.vector_store %arg6[%c68, %c0_39], %40 {strides = array<i32>} : memref<72x32xf32, #tpu.memory_space<vmem>>, vector<4x32xf32>,
    %c0_40 = arith.constant 0 : index
    %c0_41 = arith.constant 0 : index
    %42 = tpu.strided_load %arg6[%c0_40, %c0_41] {strides = array<i32: 4, 1>} : memref<72x32xf32, #tpu.memory_space<vmem>>, vector<18x32xf32>
    %c1_42 = arith.constant 1 : index
    %c0_43 = arith.constant 0 : index
    %43 = tpu.strided_load %arg6[%c1_42, %c0_43] {strides = array<i32: 4, 1>} : memref<72x32xf32, #tpu.memory_space<vmem>>, vector<18x32xf32>
    %44 = arith.maximumf %42, %43 : vector<18x32xf32>
    %c2_44 = arith.constant 2 : index
    %c0_45 = arith.constant 0 : index
    %45 = tpu.strided_load %arg6[%c2_44, %c0_45] {strides = array<i32: 4, 1>} : memref<72x32xf32, #tpu.memory_space<vmem>>, vector<18x32xf32>
    %46 = arith.maximumf %44, %45 : vector<18x32xf32>
    %c3_46 = arith.constant 3 : index
    %c0_47 = arith.constant 0 : index
    %47 = tpu.strided_load %arg6[%c3_46, %c0_47] {strides = array<i32: 4, 1>} : memref<72x32xf32, #tpu.memory_space<vmem>>, vector<18x32xf32>
    %48 = arith.maximumf %46, %47 : vector<18x32xf32>
    %49 = vector.extract_strided_slice %48 {offsets = [0, 0], sizes = [16, 32], strides = [1, 1]} : vector<18x32xf32> to vector<16x32xf32>
    %50 = vector.extract_strided_slice %48 {offsets = [1, 0], sizes = [16, 32], strides = [1, 1]} : vector<18x32xf32> to vector<16x32xf32>
    %51 = arith.maximumf %49, %50 : vector<16x32xf32>
    %52 = vector.extract_strided_slice %42 {offsets = [2, 0], sizes = [16, 32], strides = [1, 1]} : vector<18x32xf32> to vector<16x32xf32>
    %53 = arith.maximumf %51, %52 : vector<16x32xf32>
    %54 = arith.truncf %53 : vector<16x32xf32> to vector<16x32xbf16>
    %c0_48 = arith.constant 0 : index
    %c0_49 = arith.constant 0 : index
    %c0_50 = arith.constant 0 : index
    %55 = vector.load %arg5[%c0_48, %c0_49, %c0_50] : memref<1x16x32xbf16, #tpu.memory_space<vmem>>, vector<1x16x32xbf16>
    %56 = vector.shape_cast %55 : vector<1x16x32xbf16> to vector<16x32xbf16>
    %57 = vector.shape_cast %54 : vector<16x32xbf16> to vector<1x16x32xbf16>
    tpu.vector_store %arg5[%c0_48, %c0_49, %c0_50], %57 {strides = array<i32>} : memref<1x16x32xbf16, #tpu.memory_space<vmem>>, vector<1x16x32xbf16>,
    return
  }
  func.func @transform_0(%arg0: i32) -> (i32, i32, i32) {
    %c0_i32 = arith.constant 0 : i32
    %c0_i32_0 = arith.constant 0 : i32
    %c0_i32_1 = arith.constant 0 : i32
    return %arg0, %c0_i32, %c0_i32_0 : i32, i32, i32
  }
  func.func @transform_1(%arg0: i32) -> (i32, i32) {
    %c0_i32 = arith.constant 0 : i32
    %c0_i32_0 = arith.constant 0 : i32
    %c0_i32_1 = arith.constant 0 : i32
    return %c0_i32, %c0_i32_0 : i32, i32
  }
  func.func @transform_2(%arg0: i32) -> (i32, i32) {
    %c0_i32 = arith.constant 0 : i32
    %c0_i32_0 = arith.constant 0 : i32
    %c0_i32_1 = arith.constant 0 : i32
    return %c0_i32, %c0_i32_0 : i32, i32
  }
  func.func @transform_3(%arg0: i32) -> (i32, i32) {
    %c0_i32 = arith.constant 0 : i32
    %c0_i32_0 = arith.constant 0 : i32
    %c0_i32_1 = arith.constant 0 : i32
    return %c0_i32, %c0_i32_0 : i32, i32
  }
  func.func @transform_4(%arg0: i32) -> (i32, i32, i32) {
    %c0_i32 = arith.constant 0 : i32
    %c0_i32_0 = arith.constant 0 : i32
    %c0_i32_1 = arith.constant 0 : i32
    return %arg0, %c0_i32, %c0_i32_0 : i32, i32, i32
  }
}

</mosaic_0001>

<bundles_post_ra>
// kernel: tpu_custom_call.1
= control target key start
LH: loop header
LB: loop body
LE: loop exit
PB: predicated region body
PF: predicated region fallthrough
CT: control target
= control target key end

     0   :  { %9 = vsyncpa [#allocation4], 0  ;;  %s1712_s0 = inlined_call_operand.vmem [shape: f32[2,76,4], index: 0, kind: input, shape index: {}]   ;;  %s1713_s1 = inlined_call_operand.vmem [shape: f32[52,32], index: 1, kind: input, shape index: {}]   ;;  %s1714_s2 = inlined_call_operand.vmem [shape: f32[1,32], index: 2, kind: input, shape index: {}]   ;;  %s1715_s3 = inlined_call_operand.vmem [shape: f32[1,32], index: 3, kind: input, shape index: {}]   ;;  %s1716_s4 = inlined_call_operand.hbm [shape: bf16[2,16,32], index: 4, kind: output, shape index: {}]  }
   0x1   :  { %11 = vsyncpa [#allocation4 + $0x1], 0  ;;  %s1190_s15 = smov 0   ;;  %s1192_s16 = smov 0  }
   0x2   :  { %s1194_s17 = smov 0   ;;  %s1196_s18 = smov 0  }
   0x3 LB: > { %s1211_s19 = sadd.s32 4294967295, %s1149_s18   ;;  %s989_s20 = sadd.s32 4294967294, %s1149_s18   ;;  %s1149_s18 = sphi %s1196_s18, %s1722_s18   ;;  %s1145_s17 = sphi %s1194_s17, %s1721_s17   ;;  %s1141_s16 = sphi %s1192_s16, %s1720_s16   ;;  %s1137_s15 = sphi %s1190_s15, %s1719_s15  }
   0x4   : > { %s1215_s21 = sadd.s32 1, %s1149_s18   ;;  %s113_s22 = sadd.s32 1, %s1145_s17 }
   0x5   : > { %s110_s23 = ssub.s32 %s1149_s18, %s1215_s21  ;;  %p123_p0 = scmp.ne.s32.totalorder %s1145_s17, %s1141_s16 }
   0x6   : > { %p111_p1 = scmp.eq.s32.totalorder %s110_s23, 0  ;;  %p124_p2 = scmp.eq.s32.totalorder %s1211_s19, 1 }
   0x7   : > { %p129_p3 = scmp.ne.s32.totalorder %s1141_s16, %s1137_s15  ;;  %p130_p4 = scmp.eq.s32.totalorder %s989_s20, 1 }
   0x8   : > { %s1226_s24 = scalar_select %p111_p1, %s1145_s17, %s113_s22  }
   0x9   : > { %p1228_p5 = por %p124_p2, %p123_p0  ;;  %p1232_p6 = por %p130_p4, %p129_p3 }
   0xa   : > { %p992_p7 = scmp.ge.s32.totalorder %s1149_s18, 1  ;;  %p165_p8 = scmp.lt.s32.totalorder %s1149_s18, 3 }
   0xc   : > { %p166_p9 = pnand %p992_p7, %p165_p8 }
   0xd   : > { %p191_p10 = scmp.lt.s32.totalorder (!%p166_p9), %s1211_s19, 1  ;;  %s1151_s6 = smov (!%p166_p9), 4  }
   0xe   : > { %169 = sbr.rel (%p166_p9) target bundleno = 552 (0x228), region = 36  ;;  %s1152_s7 = smov (!%p166_p9), 8  }
   0xf   : > { %s1153_s8 = smov (!%p166_p9), 12   ;;  %s1154_s9 = smov (!%p166_p9), 20  }
  0x10   : > { %s1155_s10 = smov (!%p166_p9), 16   ;;  %s1156_s11 = smov (!%p166_p9), 24  }
  0x11   : > { %s1157_s12 = smov (!%p166_p9), 28   ;;  %s1158_s13 = smov (!%p166_p9), 32  }
  0x12   : > { %s1159_s14 = smov (!%p166_p9), 36   ;;  %s1160_s20 = smov (!%p166_p9), 40  }
  0x13   : > { %s192_s27 = scalar_select %p191_p10, %s1211_s19, 1  ;;  %vm621_vm0 = vcmask 31744   ;;  %vm630_vm1 = vcmask 64512   ;;  %vm639_vm2 = vcmask 97280   ;;  %vm648_vm3 = vcmask 130048  }
  0x14   : > { %s1161_s22 = smov 44   ;;  %s1162_s23 = smov 48   ;;  %vm657_vm4 = vcmask 162816   ;;  %vm666_vm5 = vcmask 195584   ;;  %vm675_vm6 = vcmask 228352   ;;  %vm684_vm7 = vcmask 261120  }
  0x15   : > { %s1031_s28 = smul.u32 80, %s192_s27  ;;  %vm761_vm8 = vcmask 1043456   ;;  %vm693_vm9 = vcmask 293888   ;;  %vm702_vm10 = vcmask 326656   ;;  %vm711_vm11 = vcmask 359424  }
  0x16   : > { %vm720_vm12 = vcmask 392192   ;;  %vm736_vm13 = vcmask 424960   ;;  %vm838_vm14 = vcmask 257024   ;;  %vm884_vm15 = vcmask 1046528  }
  0x17   : > { %s1243_s5 = scalar_lea.vmem %s1712_s0, %s1031_s28 }
  0x18   : > { %v1246_v0 = vld [vmem:[%s1243_s5 + $0x21] sm:$0xff]  ;;  %v1249_v1 = vld [vmem:[%s1243_s5 + $0x11] sm:$0xff]  ;;  %v1258_v3 = vld [vmem:[%s1243_s5 + $0x29] sm:$0xff] }
  0x19   : > { %v204_v2 = vld [vmem:[%s1243_s5 + $0x1] sm:$0xff]  ;;  %281 = vrot.lane.b32.xlu2 %v1246_v0, %s1151_s6  ;;  %277 = vrot.lane.b32.xlu1 %v1249_v1, %s1151_s6  ;;  %v1261_v4 = vld [vmem:[%s1243_s5 + $0x19] sm:$0xff] }
  0x1a   : > { %273 = vrot.lane.b32.xlu0 %v204_v2, %s1151_s6  ;;  %v1264_v5 = vld [vmem:[%s1243_s5 + $0x9] sm:$0xff]  ;;  %v211_v7 = vld [vmem:[%s1243_s5 + $0x39] sm:$0xff]  ;;  %v1275_v8 = vld [vmem:[%s1243_s5 + $0x31] sm:$0xff] }
  0x1b   : > { %v212_v6 = vld [vmem:[%s1243_s5 + $0x2] sm:$0xff]  ;;  %v1281_v9 = vld [vmem:[%s1243_s5 + $0x1a] sm:$0xff]  ;;  %v1284_v10 = vld [vmem:[%s1243_s5 + $0x12] sm:$0xff] }
  0x1c   : > { %v1287_v11 = vld [vmem:[%s1243_s5 + $0xa] sm:$0xff]  ;;  %v1293_v12 = vld [vmem:[%s1243_s5 + $0x32] sm:$0xff]  ;;  %v1297_v14 = vld [vmem:[%s1243_s5 + $0x22] sm:$0xff] }
  0x1d   : > { %v217_v13 = vld [vmem:[%s1243_s5 + $0x2a] sm:$0xff]  ;;  %v219_v17 = vld [vmem:[%s1243_s5 + $0x3a] sm:$0xff] }
  0x1e   : > { %v1302_v15 = vld [vmem:[%s1243_s5 + $0xb] sm:$0xff]  ;;  %v220_v16 = vld [vmem:[%s1243_s5 + $0x3] sm:$0xff]  ;;  %v1311_v19 = vld [vmem:[%s1243_s5 + $0x1b] sm:$0xff] }
  0x1f   : > { %v1308_v18 = vld [vmem:[%s1243_s5 + $0x23] sm:$0xff]  ;;  %v1314_v20 = vld [vmem:[%s1243_s5 + $0x13] sm:$0xff]  ;;  %v227_v21 = vld [vmem:[%s1243_s5 + $0x3b] sm:$0xff] }
  0x20   : > { %v1321_v22 = vld [vmem:[%s1243_s5 + $0x33] sm:$0xff]  ;;  %v225_v23 = vld [vmem:[%s1243_s5 + $0x2b] sm:$0xff]  ;;  %v196_v44 = vld [vmem:[%s1243_s5] sm:$0xff] }
  0x21   : > { %283 = vrot.lane.b32.xlu2 %v1258_v3, %s1151_s6  ;;  %279 = vrot.lane.b32.xlu1 %v1261_v4, %s1151_s6  ;;  %v240_v24 = vld [vmem:[%s1243_s5 + $0x25] sm:$0xff]  ;;  %v1327_v25 = vld [vmem:[%s1243_s5 + $0x34] sm:$0xff] }
  0x22   : > { %275 = vrot.lane.b32.xlu0 %v1264_v5, %s1151_s6  ;;  %v1330_v26 = vld [vmem:[%s1243_s5 + $0x24] sm:$0xff]  ;;  %v250_v27 = vld [vmem:[%s1243_s5 + $0x36] sm:$0xff]  ;;  %v233_v42 = vld [vmem:[%s1243_s5 + $0x2c] sm:$0xff] }
  0x23   : > { %v248_v28 = vld [vmem:[%s1243_s5 + $0x26] sm:$0xff]  ;;  %v242_v29 = vld [vmem:[%s1243_s5 + $0x35] sm:$0xff] }
  0x24   : > { %v258_v30 = vld [vmem:[%s1243_s5 + $0x37] sm:$0xff]  ;;  %v201_v31 = vld [vmem:[%s1243_s5 + $0x28] sm:$0xff] }
  0x25   : > { %v256_v32 = vld [vmem:[%s1243_s5 + $0x27] sm:$0xff]  ;;  %v203_v33 = vld [vmem:[%s1243_s5 + $0x38] sm:$0xff]  ;;  %v1376_v43 = vld [vmem:[%s1243_s5 + $0x10] sm:$0xff] }
  0x26   : > { %v1357_v35 = vld [vmem:[%s1243_s5 + $0x14] sm:$0xff]  ;;  %v228_v36 = vld [vmem:[%s1243_s5 + $0x4] sm:$0xff]  ;;  %v235_v53 = vld [vmem:[%s1243_s5 + $0x3c] sm:$0xff] }
  0x27   : > { %v236_v39 = vld [vmem:[%s1243_s5 + $0x5] sm:$0xff]  ;;  %v238_v40 = vld [vmem:[%s1243_s5 + $0x15] sm:$0xff]  ;;  %v241_v62 = vld [vmem:[%s1243_s5 + $0x2d] sm:$0xff] }
  0x28   : > { %v244_v50 = vld [vmem:[%s1243_s5 + $0x6] sm:$0xff]  ;;  %v246_v51 = vld [vmem:[%s1243_s5 + $0x16] sm:$0xff] }
  0x29   : > { %305 = vrot.lane.b32.xlu2 %v212_v6, %s1152_s7  ;;  %287 = vrot.lane.b32.xlu1 %v211_v7, %s1151_s6  ;;  %v199_v54 = vld [vmem:[%s1243_s5 + $0x18] sm:$0xff]  ;;  %v197_v55 = vld [vmem:[%s1243_s5 + $0x8] sm:$0xff] }
  0x2a   : > { %285 = vrot.lane.b32.xlu0 %v1275_v8, %s1151_s6  ;;  %v202_v63 = vld [vmem:[%s1243_s5 + $0x30] sm:$0xff] }
  0x31   : > { %311 = vrot.lane.b32.xlu2 %v1281_v9, %s1152_s7  ;;  %309 = vrot.lane.b32.xlu1 %v1284_v10, %s1152_s7 }
  0x32   : > { %307 = vrot.lane.b32.xlu0 %v1287_v11, %s1152_s7 }
  0x39   : > { %317 = vrot.lane.b32.xlu2 %v1293_v12, %s1152_s7  ;;  %315 = vrot.lane.b32.xlu1 %v217_v13, %s1152_s7 }
  0x3a   : > { %313 = vrot.lane.b32.xlu0 %v1297_v14, %s1152_s7 }
  0x41   : > { %339 = vrot.lane.b32.xlu2 %v1302_v15, %s1153_s8  ;;  %337 = vrot.lane.b32.xlu1 %v220_v16, %s1153_s8  ;;  %v252_v16 = vld [vmem:[%s1243_s5 + $0x7] sm:$0xff] }
  0x42   : > { %319 = vrot.lane.b32.xlu0 %v219_v17, %s1152_s7 }
  0x49   : > { %345 = vrot.lane.b32.xlu2 %v1308_v18, %s1153_s8  ;;  %343 = vrot.lane.b32.xlu1 %v1311_v19, %s1153_s8 }
  0x4a   : > { %341 = vrot.lane.b32.xlu0 %v1314_v20, %s1153_s8 }
  0x51   : > { %351 = vrot.lane.b32.xlu2 %v227_v21, %s1153_s8  ;;  %349 = vrot.lane.b32.xlu1 %v1321_v22, %s1153_s8 }
  0x52   : > { %347 = vrot.lane.b32.xlu0 %v225_v23, %s1153_s8 }
  0x59   : > { %409 = vrot.lane.b32.xlu2 %v240_v24, %s1154_s9  ;;  %381 = vrot.lane.b32.xlu1 %v1327_v25, %s1155_s10 }
  0x5a   : > { %377 = vrot.lane.b32.xlu0 %v1330_v26, %s1155_s10 }
  0x61   : > { %445 = vrot.lane.b32.xlu2 %v250_v27, %s1156_s11  ;;  %441 = vrot.lane.b32.xlu1 %v248_v28, %s1156_s11 }
  0x62   : > { %413 = vrot.lane.b32.xlu0 %v242_v29, %s1154_s9 }
  0x69   : > { %477 = vrot.lane.b32.xlu1 %v258_v30, %s1157_s12  ;;  %505 = vrot.lane.b32.xlu2 %v201_v31, %s1158_s13 }
  0x6a   : > { %473 = vrot.lane.b32.xlu0 %v256_v32, %s1157_s12 }
  0x71   : > { %530 = vrot.lane.b32.xlu1 %v1258_v3, %s1159_s14  ;;  %534 = vrot.lane.b32.xlu2 %v211_v7, %s1159_s14 }
  0x72   : > { %509 = vrot.lane.b32.xlu0 %v203_v33, %s1158_s13 }
  0x73   : > { %v1354_v34 = vpop.permute.xlu2 %281 }
  0x79   : > { %373 = vrot.lane.b32.xlu1 %v1357_v35, %s1155_s10  ;;  %555 = vrot.lane.b32.xlu2 %v217_v13, %s1160_s20 }
  0x7a   : > { %369 = vrot.lane.b32.xlu0 %v228_v36, %s1155_s10  ;;  %v1419_v36 = vld [vmem:[%s1243_s5 + $0x20] sm:$0xff] }
  0x7b   : > { %v284_v37 = vpop.permute.xlu2 %283 }
  0x7c   : > { %v1365_v38 = vsel %vm621_vm0, %v201_v31, %v284_v37  ;;  %v251_v31 = vld [vmem:[%s1243_s5 + $0x3e] sm:$0xff] }
  0x81   : > { %401 = vrot.lane.b32.xlu1 %v236_v39, %s1154_s9  ;;  %405 = vrot.lane.b32.xlu2 %v238_v40, %s1154_s9  ;;  %v626_v40 = vsel %vm621_vm0, %v1419_v36, %v1354_v34 }
  0x82   : > { %559 = vrot.lane.b32.xlu0 %v219_v17, %s1160_s20  ;;  %v254_v17 = vld [vmem:[%s1243_s5 + $0x17] sm:$0xff] }
  0x83   : > { %v306_v41 = vpop.permute.xlu2 %305 }
  0x89   : > { %584 = vrot.lane.b32.xlu1 %v227_v21, %s1161_s22  ;;  %379 = vrot.lane.b32.xlu2 %v233_v42, %s1155_s10 }
  0x8a   : > { %580 = vrot.lane.b32.xlu0 %v225_v23, %s1161_s22  ;;  %v243_v23 = vld [vmem:[%s1243_s5 + $0x3d] sm:$0xff] }
  0x8b   : > { %v312_v45 = vpop.permute.xlu2 %311  ;;  %v278_v46 = vpop.permute.xlu1 %277 }
  0x8c   : > { %v624_v47 = vsel %vm621_vm0, %v1376_v43, %v278_v46  ;;  %v274_v48 = vpop.permute.xlu0 %273  ;;  %v259_v46 = vld [vmem:[%s1243_s5 + $0x3f] sm:$0xff] }
  0x8d   : > { %v622_v49 = vsel %vm621_vm0, %v196_v44, %v274_v48 }
  0x8e   : > { %v631_v52 = vsel %vm630_vm1, %v622_v49, %v306_v41 }
  0x91   : > { %433 = vrot.lane.b32.xlu1 %v244_v50, %s1156_s11  ;;  %437 = vrot.lane.b32.xlu2 %v246_v51, %s1156_s11 }
  0x92   : > { %383 = vrot.lane.b32.xlu0 %v235_v53, %s1155_s10 }
  0x93   : > { %v318_v56 = vpop.permute.xlu2 %317  ;;  %v280_v57 = vpop.permute.xlu1 %279 }
  0x94   : > { %v625_v58 = vsel %vm621_vm0, %v199_v54, %v280_v57  ;;  %v276_v59 = vpop.permute.xlu0 %275  ;;  %v260_v57 = vld [vmem:[%s1243_s5 + $0x40] sm:$0xff] }
  0x95   : > { %v623_v60 = vsel %vm621_vm0, %v197_v55, %v276_v59  ;;  %v634_v61 = vsel %vm630_vm1, %v625_v58, %v312_v45  ;;  %v257_v45 = vld [vmem:[%s1243_s5 + $0x2f] sm:$0xff] }
  0x99   : > { %609 = vrot.lane.b32.xlu1 %v235_v53, %s1162_s23  ;;  %411 = vrot.lane.b32.xlu2 %v241_v62, %s1154_s9 }
  0x9a   : > { %605 = vrot.lane.b32.xlu0 %v233_v42, %s1162_s23 }
  0x9b   : > { %v340_v2 = vpop.permute.xlu2 %339  ;;  %v288_v3 = vpop.permute.xlu1 %287 }
  0x9c   : > { %v629_v6 = vsel %vm621_vm0, %v203_v33, %v288_v3  ;;  %v286_v7 = vpop.permute.xlu0 %285  ;;  %v249_v33 = vld [vmem:[%s1243_s5 + $0x2e] sm:$0xff] }
  0x9d   : > { %v628_v13 = vsel %vm621_vm0, %v202_v63, %v286_v7  ;;  %vm897_vm0 = vcmask 1045504  }
  0x9e   : > { %v1405_v21 = vsel %vm630_vm1, %v628_v13, %v318_v56 }
  0xa1   : > { %465 = vrot.lane.b32.xlu1 %v252_v16, %s1157_s12  ;;  %469 = vrot.lane.b32.xlu2 %v254_v17, %s1157_s12  ;;  %v262_v17 = vld [vmem:[%s1243_s5 + $0x42] sm:$0xff] }
  0xa2   : > { %415 = vrot.lane.b32.xlu0 %v243_v23, %s1154_s9 }
  0xa3   : > { %v346_v24 = vpop.permute.xlu2 %345  ;;  %v310_v27 = vpop.permute.xlu1 %309 }
  0xa4   : > { %v633_v28 = vsel %vm630_vm1, %v624_v47, %v310_v27  ;;  %v308_v29 = vpop.permute.xlu0 %307 }
  0xa5   : > { %v632_v30 = vsel %vm630_vm1, %v623_v60, %v308_v29  ;;  %v261_v60 = vld [vmem:[%s1243_s5 + $0x41] sm:$0xff]  ;;  %v735_v29 = vld [vmem:[%s1713_s1 + $0x30] sm:$0xf] }
  0xa6   : > { %v1415_v32 = vsel %vm639_vm2, %v632_v30, %v340_v2  ;;  %v231_v2 = vld [vmem:[%s1243_s5 + $0x1c] sm:$0xff]  ;;  %v237_v30 = vld [vmem:[%s1243_s5 + $0xd] sm:$0xff]  ;;  %1011 = vmatpush.msk.msra.mxu2 %vm761_vm8, %v735_v29  ;;  %1012 = vmatpush.msk.msra.mxu3 %vm761_vm8, %v735_v29 }
  0xa7   : > { %995 = vmatpush.msk.msra.mxu0 %vm761_vm8, %v735_v29  ;;  %1010 = vmatpush.msk.msra.mxu1 %vm761_vm8, %v735_v29 }
  0xa9   : > { %447 = vrot.lane.b32.xlu1 %v251_v31, %s1156_s11  ;;  %497 = vrot.lane.b32.xlu2 %v197_v55, %s1158_s13  ;;  %v239_v31 = vld [vmem:[%s1243_s5 + $0x1d] sm:$0xff] }
  0xaa   : > { %443 = vrot.lane.b32.xlu0 %v249_v33, %s1156_s11 }
  0xab   : > { %v352_v37 = vpop.permute.xlu2 %351  ;;  %v316_v39 = vpop.permute.xlu1 %315 }
  0xac   : > { %v636_v41 = vsel %vm630_vm1, %v1365_v38, %v316_v39  ;;  %v314_v42 = vpop.permute.xlu0 %313 }
  0xad   : > { %v635_v44 = vsel %vm630_vm1, %v626_v40, %v314_v42  ;;  %v733_v42 = vld [vmem:[%s1713_s1 + $0x20] sm:$0xff] }
  0xae   : > { %v644_v47 = vsel %vm639_vm2, %v635_v44, %v346_v24  ;;  %v732_v44 = vld [vmem:[%s1713_s1 + $0x18] sm:$0xff] }
  0xb1   : > { %475 = vrot.lane.b32.xlu1 %v257_v45, %s1157_s12  ;;  %479 = vrot.lane.b32.xlu2 %v259_v46, %s1157_s12  ;;  %v263_v45 = vld [vmem:[%s1243_s5 + $0x43] sm:$0xff]  ;;  %v245_v46 = vld [vmem:[%s1243_s5 + $0xe] sm:$0xff] }
  0xb2   : > { %501 = vrot.lane.b32.xlu0 %v199_v54, %s1158_s13 }
  0xb3   : > { %v410_v48 = vpop.permute.xlu2 %409  ;;  %v338_v49 = vpop.permute.xlu1 %337 }
  0xb4   : > { %v1437_v34 = vsel %vm639_vm2, %v631_v52, %v338_v49  ;;  %v320_v38 = vpop.permute.xlu0 %319 }
  0xb5   : > { %v638_v50 = vsel %vm630_vm1, %v629_v6, %v320_v38 }
  0xb6   : > { %v1441_v51 = vsel %vm639_vm2, %v638_v50, %v352_v37 }
  0xb9   : > { %526 = vrot.lane.b32.xlu1 %v1261_v4, %s1159_s14  ;;  %507 = vrot.lane.b32.xlu2 %v202_v63, %s1158_s13  ;;  %v229_v63 = vld [vmem:[%s1243_s5 + $0xc] sm:$0xff] }
  0xba   : > { %522 = vrot.lane.b32.xlu0 %v1264_v5, %s1159_s14 }
  0xbb   : > { %v446_v53 = vpop.permute.xlu2 %445  ;;  %v344_v54 = vpop.permute.xlu1 %343 }
  0xbc   : > { %v1449_v52 = vsel %vm639_vm2, %v634_v61, %v344_v54  ;;  %v342_v55 = vpop.permute.xlu0 %341 }
  0xbd   : > { %v1452_v56 = vsel %vm639_vm2, %v633_v28, %v342_v55 }
  0xc1   : > { %547 = vrot.lane.b32.xlu1 %v1287_v11, %s1160_s20  ;;  %551 = vrot.lane.b32.xlu2 %v1281_v9, %s1160_s20 }
  0xc2   : > { %511 = vrot.lane.b32.xlu0 %v260_v57, %s1158_s13 }
  0xc3   : > { %v350_v4 = vpop.permute.xlu1 %349  ;;  %v506_v5 = vpop.permute.xlu2 %505 }
  0xc4   : > { %v348_v58 = vpop.permute.xlu0 %347 }
  0xc5   : > { %v645_v59 = vsel %vm639_vm2, %v636_v41, %v348_v58 }
  0xc9   : > { %536 = vrot.lane.b32.xlu1 %v261_v60, %s1159_s14  ;;  %572 = vrot.lane.b32.xlu2 %v1302_v15, %s1161_s22  ;;  %v255_v60 = vld [vmem:[%s1243_s5 + $0x1f] sm:$0xff] }
  0xca   : > { %532 = vrot.lane.b32.xlu0 %v1275_v8, %s1159_s14  ;;  %v646_v8 = vsel %vm639_vm2, %v1405_v21, %v350_v4  ;;  %v247_v4 = vld [vmem:[%s1243_s5 + $0x1e] sm:$0xff] }
  0xcb   : > { %v382_v9 = vpop.permute.xlu1 %381  ;;  %v1467_v11 = vpop.permute.xlu2 %534 }
  0xcc   : > { %v378_v61 = vpop.permute.xlu0 %377  ;;  %v655_v7 = vsel %vm648_vm3, %v646_v8, %v382_v9  ;;  %v253_v9 = vld [vmem:[%s1243_s5 + $0xf] sm:$0xff] }
  0xcd   : > { %v653_v62 = vsel %vm648_vm3, %v644_v47, %v378_v61  ;;  %v731_v47 = vld [vmem:[%s1713_s1 + $0x10] sm:$0xff] }
  0xce   : > { %v662_v3 = vsel %vm657_vm4, %v653_v62, %v410_v48  ;;  %v730_v48 = vld [vmem:[%s1713_s1 + $0x8] sm:$0xff] }
  0xd1   : > { %371 = vrot.lane.b32.xlu1 %v229_v63, %s1155_s10  ;;  %375 = vrot.lane.b32.xlu2 %v231_v2, %s1155_s10 }
  0xd2   : > { %576 = vrot.lane.b32.xlu0 %v1311_v19, %s1161_s22 }
  0xd3   : > { %v442_v15 = vpop.permute.xlu1 %441  ;;  %v1479_v6 = vpop.permute.xlu2 %555 }
  0xd4   : > { %v414_v13 = vpop.permute.xlu0 %413  ;;  %v671_v24 = vsel %vm666_vm5, %v662_v3, %v442_v15 }
  0xd5   : > { %v664_v16 = vsel %vm657_vm4, %v655_v7, %v414_v13 }
  0xd6   : > { %v1485_v23 = vsel %vm666_vm5, %v664_v16, %v446_v53 }
  0xd9   : > { %561 = vrot.lane.b32.xlu1 %v262_v17, %s1160_s20  ;;  %597 = vrot.lane.b32.xlu2 %v229_v63, %s1162_s23 }
  0xda   : > { %557 = vrot.lane.b32.xlu0 %v1293_v12, %s1160_s20  ;;  %v734_v12 = vld [vmem:[%s1713_s1 + $0x28] sm:$0xff] }
  0xdb   : > { %v1491_v19 = vpop.permute.xlu1 %477  ;;  %v406_v21 = vpop.permute.xlu2 %405  ;;  %1014 = vmatpush.msra.mxu2 %v734_v12  ;;  %1015 = vmatpush.msra.mxu3 %v734_v12 }
  0xdc   : > { %v474_v27 = vpop.permute.xlu0 %473  ;;  %775 = vmatpush.msra.mxu0 %v734_v12  ;;  %1013 = vmatpush.msra.mxu1 %v734_v12  ;;  %v682_v8 = vsel %vm675_vm6, %v1485_v23, %v1491_v19 }
  0xdd   : > { %v680_v28 = vsel %vm675_vm6, %v671_v24, %v474_v27  ;;  %1017 = vmatpush.msra.mxu2 %v733_v42  ;;  %1018 = vmatpush.msra.mxu3 %v733_v42 }
  0xde   : > { %v1501_v33 = vsel %vm684_vm7, %v680_v28, %v506_v5  ;;  %776 = vmatpush.msra.mxu0 %v733_v42  ;;  %1016 = vmatpush.msra.mxu1 %v733_v42 }
  0xdf   : > { %1020 = vmatpush.msra.mxu2 %v732_v44  ;;  %1021 = vmatpush.msra.mxu3 %v732_v44 }
  0xe0   : > { %777 = vmatpush.msra.mxu0 %v732_v44  ;;  %1019 = vmatpush.msra.mxu1 %v732_v44 }
  0xe1   : > { %403 = vrot.lane.b32.xlu1 %v237_v30, %s1154_s9  ;;  %407 = vrot.lane.b32.xlu2 %v239_v31, %s1154_s9 }
  0xe2   : > { %601 = vrot.lane.b32.xlu0 %v231_v2, %s1162_s23  ;;  %1023 = vmatpush.msra.mxu2 %v731_v47 }
  0xe3   : > { %v1509_v37 = vpop.permute.xlu1 %530  ;;  %v380_v39 = vpop.permute.xlu2 %379  ;;  %1024 = vmatpush.msra.mxu3 %v731_v47  ;;  %778 = vmatpush.msra.mxu0 %v731_v47 }
  0xe4   : > { %v1511_v40 = vpop.permute.xlu0 %509  ;;  %v654_v41 = vsel %vm648_vm3, %v645_v59, %v380_v39  ;;  %1026 = vmatpush.msra.mxu2 %v730_v48  ;;  %1022 = vmatpush.msra.mxu1 %v731_v47 }
  0xe5   : > { %1027 = vmatpush.msra.mxu3 %v730_v48  ;;  %779 = vmatpush.msra.mxu0 %v730_v48 }
  0xe6   : > { %1025 = vmatpush.msra.mxu1 %v730_v48 }
  0xe9   : > { %586 = vrot.lane.b32.xlu1 %v263_v45, %s1161_s22  ;;  %435 = vrot.lane.b32.xlu2 %v245_v46, %s1156_s11 }
  0xea   : > { %582 = vrot.lane.b32.xlu0 %v1321_v22, %s1161_s22  ;;  %v729_v22 = vld [vmem:[%s1713_s1] sm:$0xff] }
  0xeb   : > { %v374_v49 = vpop.permute.xlu1 %373  ;;  %v438_v38 = vpop.permute.xlu2 %437  ;;  %1029 = vmatpush.msra.mxu2 %v729_v22  ;;  %1030 = vmatpush.msra.mxu3 %v729_v22 }
  0xec   : > { %v651_v50 = vsel %vm648_vm3, %v1452_v56, %v374_v49  ;;  %v370_v53 = vpop.permute.xlu0 %369  ;;  %v264_v56 = vld [vmem:[%s1243_s5 + $0x44] sm:$0xff]  ;;  %780 = vmatpush.msra.mxu0 %v729_v22  ;;  %1028 = vmatpush.msra.mxu1 %v729_v22 }
  0xed   : > { %v1539_v54 = vsel %vm648_vm3, %v1437_v34, %v370_v53  ;;  %v660_v55 = vsel %vm657_vm4, %v651_v50, %v406_v21 }
  0xee   : > { %v669_v57 = vsel %vm666_vm5, %v660_v55, %v438_v38 }
  0xf1   : > { %607 = vrot.lane.b32.xlu1 %v1327_v25, %s1162_s23  ;;  %611 = vrot.lane.b32.xlu2 %v264_v56, %s1162_s23 }
  0xf2   : > { %439 = vrot.lane.b32.xlu0 %v247_v4, %s1156_s11  ;;  %s1107_s11 = scalar_lea.hbm %s1716_s4, 16 }
  0xf3   : > { %v1549_v34 = vpop.permute.xlu1 %401  ;;  %v412_v5 = vpop.permute.xlu2 %411 }
  0xf4   : > { %v560_v58 = vpop.permute.xlu0 %559  ;;  %v663_v59 = vsel %vm657_vm4, %v654_v41, %v412_v5  ;;  %v658_v42 = vsel %vm657_vm4, %v1539_v54, %v1549_v34 }
  0xf9   : > { %471 = vrot.lane.b32.xlu1 %v255_v60, %s1157_s12  ;;  %499 = vrot.lane.b32.xlu2 %v1376_v43, %s1158_s13 }
  0xfa   : > { %467 = vrot.lane.b32.xlu0 %v253_v9, %s1157_s12 }
  0xfb   : > { %v585_v25 = vpop.permute.xlu1 %584  ;;  %v470_v61 = vpop.permute.xlu2 %469 }
  0xfc   : > { %v581_v62 = vpop.permute.xlu0 %580  ;;  %v1559_v63 = vsel %vm675_vm6, %v669_v57, %v470_v61 }
 0x101   : > { %524 = vrot.lane.b32.xlu1 %v1249_v1, %s1159_s14  ;;  %528 = vrot.lane.b32.xlu2 %v1246_v0, %s1159_s14  ;;  %v691_v1 = vsel %vm684_vm7, %v682_v8, %v1511_v40  ;;  %v698_v0 = vsel %vm693_vm9, %v1501_v33, %v1509_v37  ;;  %s188_s14 = sand.u32 1, %s1141_s16  }
 0x102   : > { %503 = vrot.lane.b32.xlu0 %v1419_v36, %s1158_s13  ;;  %v700_v36 = vsel %vm693_vm9, %v691_v1, %v1467_v11  ;;  %v707_v13 = vsel %vm702_vm10, %v698_v0, %v1479_v6  ;;  %s912_s29 = scalar_lea.sflag [#allocation4], %s188_s14 }
 0x103   : > { %v434_v2 = vpop.permute.xlu1 %433  ;;  %v498_v3 = vpop.permute.xlu2 %497  ;;  %v716_v17 = vsel %vm711_vm11, %v707_v13, %v581_v62 }
 0x104   : > { %v384_v43 = vpop.permute.xlu0 %383  ;;  %v667_v44 = vsel %vm666_vm5, %v658_v42, %v434_v2 }
 0x105   : > { %v656_v15 = vsel %vm648_vm3, %v1441_v51, %v384_v43  ;;  %v709_v51 = vsel %vm702_vm10, %v700_v36, %v560_v58 }
 0x106   : > { %v718_v7 = vsel %vm711_vm11, %v709_v51, %v585_v25 }
 0x109   : > { %553 = vrot.lane.b32.xlu1 %v1297_v14, %s1160_s20  ;;  %574 = vrot.lane.b32.xlu2 %v1314_v20, %s1161_s22 }
 0x10a   : > { %549 = vrot.lane.b32.xlu0 %v1284_v10, %s1160_s20  ;;  %s993_s20 = sshll.u32 %s188_s14, 3 }
 0x10b   : > { %v610_v16 = vpop.permute.xlu1 %609  ;;  %v480_v11 = vpop.permute.xlu2 %479  ;;  %s190_s27 = scalar_lea.vmem [#allocation3], %s993_s20 }
 0x10c   : > { %v606_v14 = vpop.permute.xlu0 %605  ;;  %v727_v23 = vsel %vm720_vm12, %v718_v7, %v610_v16 }
 0x10d   : > { %v725_v20 = vsel %vm720_vm12, %v716_v17, %v606_v14  ;;  %1002 = vmatmul.msk.f32.vlgmr.msra.gmra.mxu3 %vm736_vm13, %v727_v23 }
 0x10e   : > { %1000 = vmatmul.msk.f32.vlgmr.msra.gmra.mxu2 %vm736_vm13, %v725_v20 }
 0x111   : > { %599 = vrot.lane.b32.xlu1 %v1357_v35, %s1162_s23  ;;  %603 = vrot.lane.b32.xlu2 %v1330_v26, %s1162_s23 }
 0x112   : > { %578 = vrot.lane.b32.xlu0 %v1308_v18, %s1161_s22  ;;  %s1009_s22 = sshll.u32 %s1211_s19, 3  ;;  %s924_s19 = sshll.u32 %s190_s27, 4  ;;  %s925_s19 = int_to_ptr.vmem [resolvable:$true] %s924_s19 }
 0x113   : > { %v466_v10 = vpop.permute.xlu1 %465  ;;  %v508_v6 = vpop.permute.xlu2 %507  ;;  %s923_s10 = scalar_lea.hbm %s1716_s4, %s1009_s22 }
 0x114   : > { %v416_v19 = vpop.permute.xlu0 %415  ;;  %v676_v45 = vsel %vm675_vm6, %v667_v44, %v466_v10  ;;  %s926_s28 = sshll.u32 %s923_s10, 4  ;;  %s927_s28 = int_to_ptr.hbm [resolvable:$true] %s926_s28 }
 0x115   : > { %v665_v21 = vsel %vm657_vm4, %v656_v15, %v416_v19  ;;  %v685_v46 = vsel %vm684_vm7, %v676_v45, %v498_v3  ;;  %s1101_s30 = sshra.s32 %s927_s28, 4  ;;  %s1102_s30 = int_to_ptr.hbm [resolvable:$true] %s1101_s30 }
 0x116   : > { %s1103_s7 = scalar_lea.hbm %s1102_s30, 8  ;;  %p1108_p0 = scmp.lt.s32.totalorder %s1102_s30, %s1716_s4 }
 0x117   : > { %p1104_p11 = scmp.ne.s32.totalorder %s1102_s30, %s1103_s7  ;;  %p1109_p1 = scmp.lt.s32.totalorder %s1107_s11, %s1103_s7 }
 0x119   : > { %p1105_p12 = pnand %p1104_p11, %p1228_p5  ;;  %p1110_p2 = por %p1109_p1, %p1108_p0 }
 0x11b   : > { %v448_v24 = vpop.permute.xlu1 %447  ;;  %v552_v27 = vpop.permute.xlu2 %551  ;;  %p1106_p13 = pneg %p1105_p12 }
 0x11c   : > { %v674_v28 = vsel %vm666_vm5, %v665_v21, %v448_v24  ;;  %v444_v29 = vpop.permute.xlu0 %443 }
 0x11d   : > { %v672_v30 = vsel %vm666_vm5, %v663_v59, %v444_v29  ;;  %v683_v35 = vsel %vm675_vm6, %v674_v28, %v480_v11  ;;  %p1111_p3 = pnand %p1110_p2, %p1106_p13 }
 0x123   : > { %v476_v31 = vpop.permute.xlu1 %475  ;;  %v573_v33 = vpop.permute.xlu2 %572 }
 0x124   : > { %v681_v26 = vsel %vm675_vm6, %v672_v30, %v476_v31  ;;  %v502_v12 = vpop.permute.xlu0 %501 }
 0x125   : > { %v690_v18 = vsel %vm684_vm7, %v681_v26, %v508_v6  ;;  %v687_v5 = vsel %vm684_vm7, %v1559_v63, %v502_v12 }
 0x12b   : > { %v527_v37 = vpop.permute.xlu1 %526  ;;  %v376_v39 = vpop.permute.xlu2 %375 }
 0x12c   : > { %v523_v40 = vpop.permute.xlu0 %522  ;;  %v652_v41 = vsel %vm648_vm3, %v1449_v52, %v376_v39  ;;  %v696_v58 = vsel %vm693_vm9, %v687_v5, %v527_v37 }
 0x12d   : > { %v694_v47 = vsel %vm693_vm9, %v685_v46, %v523_v40  ;;  %v705_v60 = vsel %vm702_vm10, %v696_v58, %v552_v27  ;;  %v1163_v58 = vmov -3e+38  }
 0x12e   : > { %839 = vst.msk [vmem:[#allocation2] sm:$0xf] %vm838_vm14, %v1163_v58 }
 0x12f   : > { %848 = vst.msk [vmem:[#allocation2 + $0x44] sm:$0xf] %vm838_vm14, %v1163_v58 }
 0x133   : > { %v548_v48 = vpop.permute.xlu1 %547  ;;  %v598_v50 = vpop.permute.xlu2 %597 }
 0x134   : > { %v703_v49 = vsel %vm702_vm10, %v694_v47, %v548_v48  ;;  %v512_v38 = vpop.permute.xlu0 %511  ;;  %v1085_v48 = vld [vmem:[%s1714_s2] ss:$0 sm:$0xff] }
 0x135   : > { %v712_v53 = vsel %vm711_vm11, %v703_v49, %v573_v33  ;;  %v692_v2 = vsel %vm684_vm7, %v683_v35, %v512_v38  ;;  %v1086_v49 = vld [vmem:[%s1715_s3] ss:$0 sm:$0xff] }
 0x136   : > { %v721_v52 = vsel %vm720_vm12, %v712_v53, %v598_v50 }
 0x137   : > { %996 = vmatmul.msk.f32.vlgmr.msra.gmra.mxu0 %vm736_vm13, %v721_v52 }
 0x13b   : > { %v537_v22 = vpop.permute.xlu1 %536  ;;  %v408_v56 = vpop.permute.xlu2 %407 }
 0x13c   : > { %v533_v54 = vpop.permute.xlu0 %532  ;;  %v701_v3 = vsel %vm693_vm9, %v692_v2, %v537_v22  ;;  %v661_v35 = vsel %vm657_vm4, %v652_v41, %v408_v56 }
 0x13d   : > { %v699_v36 = vsel %vm693_vm9, %v690_v18, %v533_v54 }
 0x143   : > { %v372_v55 = vpop.permute.xlu1 %371  ;;  %v436_v59 = vpop.permute.xlu2 %435 }
 0x144   : > { %v577_v57 = vpop.permute.xlu0 %576  ;;  %v650_v19 = vsel %vm648_vm3, %v1415_v32, %v372_v55 }
 0x145   : > { %v714_v25 = vsel %vm711_vm11, %v705_v60, %v577_v57 }
 0x14b   : > { %v562_v4 = vpop.permute.xlu1 %561  ;;  %v612_v43 = vpop.permute.xlu2 %611 }
 0x14c   : > { %v558_v34 = vpop.permute.xlu0 %557  ;;  %v710_v63 = vsel %vm702_vm10, %v701_v3, %v562_v4 }
 0x14d   : > { %v708_v51 = vsel %vm702_vm10, %v699_v36, %v558_v34 }
 0x153   : > { %v404_v9 = vpop.permute.xlu1 %403  ;;  %v500_v17 = vpop.permute.xlu2 %499 }
 0x154   : > { %v602_v61 = vpop.permute.xlu0 %601  ;;  %v659_v21 = vsel %vm657_vm4, %v650_v19, %v404_v9 }
 0x155   : > { %v723_v62 = vsel %vm720_vm12, %v714_v25, %v602_v61  ;;  %v668_v27 = vsel %vm666_vm5, %v659_v21, %v436_v59 }
 0x156   : > { %998 = vmatmul.msk.f32.vlgmr.msra.gmra.mxu1 %vm736_vm13, %v723_v62 }
 0x15b   : > { %v587_v8 = vpop.permute.xlu1 %586  ;;  %v529_v20 = vpop.permute.xlu2 %528 }
 0x15c   : > { %v719_v15 = vsel %vm711_vm11, %v710_v63, %v587_v8  ;;  %v583_v1 = vpop.permute.xlu0 %582 }
 0x15d   : > { %v728_v0 = vsel %vm720_vm12, %v719_v15, %v612_v43  ;;  %v717_v7 = vsel %vm711_vm11, %v708_v51, %v583_v1 }
 0x15e   : > { %1003 = vmatmul.msk.f32.gmra.mxu3 %vm736_vm13, %v728_v0 }
 0x163   : > { %v608_v13 = vpop.permute.xlu1 %607  ;;  %v575_v24 = vpop.permute.xlu2 %574 }
 0x164   : > { %v440_v16 = vpop.permute.xlu0 %439  ;;  %v726_v11 = vsel %vm720_vm12, %v717_v7, %v608_v13 }
 0x165   : > { %1001 = vmatmul.msk.f32.gmra.mxu2 %vm736_vm13, %v726_v11  ;;  %v670_v31 = vsel %vm666_vm5, %v661_v35, %v440_v16 }
 0x16b   : > { %v472_v14 = vpop.permute.xlu1 %471  ;;  %v604_v42 = vpop.permute.xlu2 %603 }
 0x16c   : > { %v468_v23 = vpop.permute.xlu0 %467  ;;  %v679_v26 = vsel %vm675_vm6, %v670_v31, %v472_v14 }
 0x16d   : > { %v677_v28 = vsel %vm675_vm6, %v668_v27, %v468_v23 }
 0x16e   : > { %v686_v33 = vsel %vm684_vm7, %v677_v28, %v500_v17 }
 0x173   : > { %v525_v10 = vpop.permute.xlu1 %524 }
 0x174   : > { %v504_v6 = vpop.permute.xlu0 %503  ;;  %v695_v12 = vsel %vm693_vm9, %v686_v33, %v525_v10 }
 0x175   : > { %v688_v32 = vsel %vm684_vm7, %v679_v26, %v504_v6 }
 0x176   : > { %v697_v37 = vsel %vm693_vm9, %v688_v32, %v529_v20 }
 0x17b   : > { %v554_v29 = vpop.permute.xlu1 %553 }
 0x17c   : > { %v550_v30 = vpop.permute.xlu0 %549  ;;  %v706_v41 = vsel %vm702_vm10, %v697_v37, %v554_v29 }
 0x17d   : > { %v704_v18 = vsel %vm702_vm10, %v695_v12, %v550_v30 }
 0x17e   : > { %v713_v39 = vsel %vm711_vm11, %v704_v18, %v575_v24 }
 0x183   : > { %v600_v40 = vpop.permute.xlu1 %599 }
 0x184   : > { %v579_v44 = vpop.permute.xlu0 %578  ;;  %v722_v45 = vsel %vm720_vm12, %v713_v39, %v600_v40 }
 0x185   : > { %v715_v46 = vsel %vm711_vm11, %v706_v41, %v579_v44  ;;  %997 = vmatmul.msk.f32.gmra.mxu0 %vm736_vm13, %v722_v45 }
 0x186   : > { %v724_v47 = vsel %vm720_vm12, %v715_v46, %v604_v42 }
 0x187   : > { %999 = vmatmul.msk.f32.gmra.mxu1 %vm736_vm13, %v724_v47 }
 0x190   : > { %v800_v38 = vpop.f32.mrf.mxu3 }
 0x191   : > { %v794_v50 = vpop.f32.mrf.mxu2  ;;  %v816_v53 = vmul.f32 %v1085_v48, %v800_v38 }
 0x192   : > { %v814_v52 = vmul.f32 %v1085_v48, %v794_v50 }
 0x193   : > { %v828_v22 = vadd.f32 %v1086_v49, %v816_v53 }
 0x194   : > { %v826_v54 = vadd.f32 %v1086_v49, %v814_v52 }
 0x195   : > { %v836_v55 = vmax.f32 %v828_v22, 0.0 }
 0x196   : > { %v834_v57 = vmax.f32 %v826_v54, 0.0 }
 0x197   : > { %846 = vst.msk [vmem:[#allocation2 + $0x34] sm:$0xff] %vm684_vm7, %v836_v55 }
 0x198   : > { %844 = vst.msk [vmem:[#allocation2 + $0x24] sm:$0xff] %vm684_vm7, %v834_v57 }
 0x1b4   : > { %v782_v56 = vpop.f32.mrf.mxu0 }
 0x1b5   : > { %v810_v4 = vmul.f32 %v1085_v48, %v782_v56 }
 0x1b7   : > { %v822_v34 = vadd.f32 %v1086_v49, %v810_v4 }
 0x1b9   : > { %v830_v5 = vmax.f32 %v822_v34, 0.0 }
 0x1bb   : > { %840 = vst.msk [vmem:[#allocation2 + $0x4] sm:$0xff] %vm684_vm7, %v830_v5 }
 0x1d3   : > { %v788_v59 = vpop.f32.mrf.mxu1 }
 0x1d4   : > { %v812_v60 = vmul.f32 %v1085_v48, %v788_v59 }
 0x1d6   : > { %v824_v9 = vadd.f32 %v1086_v49, %v812_v60 }
 0x1d8   : > { %v832_v25 = vmax.f32 %v824_v9, 0.0 }
 0x1da   : > { %842 = vst.msk [vmem:[#allocation2 + $0x14] sm:$0xff] %vm684_vm7, %v832_v25 }
 0x1e1   : > { %v803_v61 = vpop.f32.mrf.mxu3 }
 0x1e2   : > { %v817_v62 = vmul.f32 %v1085_v48, %v803_v61 }
 0x1e4   : > { %v829_v2 = vadd.f32 %v1086_v49, %v817_v62 }
 0x1e6   : > { %v837_v3 = vmax.f32 %v829_v2, 0.0 }
 0x1e8   : > { %847 = vst.msk [vmem:[#allocation2 + $0x3c] sm:$0xff] %vm684_vm7, %v837_v3  ;;  %v797_v43 = vpop.f32.mrf.mxu2 }
 0x1e9   : > { %v815_v63 = vmul.f32 %v1085_v48, %v797_v43 }
 0x1eb   : > { %v827_v8 = vadd.f32 %v1086_v49, %v815_v63 }
 0x1ed   : > { %v835_v15 = vmax.f32 %v827_v8, 0.0 }
 0x1ef   : > { %845 = vst.msk [vmem:[#allocation2 + $0x2c] sm:$0xff] %vm684_vm7, %v835_v15  ;;  %v853_v17 = vld [vmem:[#allocation2 + $0x40] ss:$4 sm:$0x3] }
 0x1f0   : > { %v859_v14 = vld [vmem:[#allocation2 + $0x41] ss:$4 sm:$0x3]  ;;  %v868_v20 = vld [vmem:[#allocation2 + $0x42] ss:$4 sm:$0x3] }
 0x1f1   : > { %v862_v23 = vmax.f32 %v853_v17, %v859_v14  ;;  %v877_v31 = vld [vmem:[#allocation2 + $0x43] ss:$4 sm:$0x3]  ;;  %v901_v47 = vrot.slane %v853_v17, 2 }
 0x1f3   : > { %v871_v21 = vmax.f32 %v862_v23, %v868_v20 }
 0x1f5   : > { %v880_v12 = vmax.f32 %v871_v21, %v877_v31 }
 0x1f7   : > { %v888_v42 = vrot.slane %v880_v12, 1 }
 0x202   : > { %v785_v1 = vpop.f32.mrf.mxu0 }
 0x203   : > { %v811_v0 = vmul.f32 %v1085_v48, %v785_v1 }
 0x204   : > { %v791_v36 = vpop.f32.mrf.mxu1 }
 0x205   : > { %v823_v51 = vadd.f32 %v1086_v49, %v811_v0  ;;  %v813_v7 = vmul.f32 %v1085_v48, %v791_v36 }
 0x207   : > { %v831_v13 = vmax.f32 %v823_v51, 0.0  ;;  %v825_v16 = vadd.f32 %v1086_v49, %v813_v7 }
 0x209   : > { %841 = vst.msk [vmem:[#allocation2 + $0xc] sm:$0xff] %vm684_vm7, %v831_v13  ;;  %v833_v11 = vmax.f32 %v825_v16, 0.0 }
 0x20b   : > { %843 = vst.msk [vmem:[#allocation2 + $0x1c] sm:$0xff] %vm684_vm7, %v833_v11 }
 0x212   : > { %v849_v10 = vld [vmem:[#allocation2] ss:$4 sm:$0xff]  ;;  %v855_v19 = vld [vmem:[#allocation2 + $0x1] ss:$4 sm:$0xff]  ;;  %v864_v29 = vld [vmem:[#allocation2 + $0x2] ss:$4 sm:$0xff] }
 0x213   : > { %v851_v6 = vld [vmem:[#allocation2 + $0x20] ss:$4 sm:$0xff]  ;;  %v857_v24 = vld [vmem:[#allocation2 + $0x21] ss:$4 sm:$0xff]  ;;  %v860_v27 = vmax.f32 %v849_v10, %v855_v19  ;;  %v866_v30 = vld [vmem:[#allocation2 + $0x22] ss:$4 sm:$0xff] }
 0x214   : > { %v861_v28 = vmax.f32 %v851_v6, %v857_v24  ;;  %v873_v26 = vld [vmem:[#allocation2 + $0x3] ss:$4 sm:$0xff]  ;;  %v898_v41 = vrot.slane %v849_v10, 2  ;;  %v899_v44 = vrot.slane %v851_v6, 2 }
 0x215   : > { %v869_v35 = vmax.f32 %v860_v27, %v864_v29  ;;  %v875_v32 = vld [vmem:[#allocation2 + $0x23] ss:$4 sm:$0xff] }
 0x216   : > { %v870_v33 = vmax.f32 %v861_v28, %v866_v30  ;;  %v900_v38 = vsel %vm897_vm0, %v898_v41, %v899_v44  ;;  %v902_v50 = vsel %vm897_vm0, %v899_v44, %v901_v47 }
 0x217   : > { %v878_v18 = vmax.f32 %v869_v35, %v873_v26 }
 0x218   : > { %v879_v37 = vmax.f32 %v870_v33, %v875_v32 }
 0x219   : > { %v885_v39 = vrot.slane %v878_v18, 1 }
 0x21a   : > { %v886_v40 = vrot.slane %v879_v37, 1 }
 0x21c   : > { %v887_v45 = vsel %vm884_vm15, %v885_v39, %v886_v40  ;;  %v889_v46 = vsel %vm884_vm15, %v886_v40, %v888_v42 }
 0x21d   : > { %v892_v48 = vmax.f32 %v878_v18, %v887_v45  ;;  %v893_v49 = vmax.f32 %v879_v37, %v889_v46 }
 0x21f   : > { %v905_v53 = vmax.f32 %v892_v48, %v900_v38  ;;  %v906_v52 = vmax.f32 %v893_v49, %v902_v50 }
 0x221   : > { %v907_v22 = vpack.c.bf16 %v905_v53, %v905_v53  ;;  %v908_v54 = vpack.c.bf16 %v906_v52, %v906_v52 }
 0x223   : > { %909 = vst.msk [vmem:[%s190_s27] sm:$0xf] %vm838_vm14, %v907_v22 }
 0x224   : > { %910 = vst.msk [vmem:[%s190_s27 + $0x4] sm:$0xf] %vm838_vm14, %v908_v54 }
 0x225   : > { %1114 = shalt.err (!%p1111_p3)
}
 0x226   : > { %s1164_s14 = smov 64  }
 0x227   : > { %1032 = dma.vmem_to_hbm [thread:$0]  (%p1228_p5), %s925_s19, 128, %s927_s28, %s912_s29, %s1164_s14, %s1164_s14, %s1151_s6  }
 0x228 PF: > { %p1038_p4 = scmp.ge.s32.totalorder %s1149_s18, 2  ;;  %s941_s20 = sand.u32 1, %s1137_s15  }
 0x229   : > { %s942_s22 = scalar_lea.sflag [#allocation4], %s941_s20 }
 0x22a   : > { %p1035_p7 = pnand %p1038_p4, %p1232_p6 }
 0x22c   : > { %p1036_p8 = pneg %p1035_p7 }
 0x22e   : > { %1132 = dma.done.wait (%p1036_p8), %s942_s22, 128  }
 0x22f   : > { %1134 = vsyncadd (%p1036_p8), %s942_s22, 4294967168  ;;  %p14_p9 = scmp.ge.s32.totalorder %s1215_s21, 4   ;;  %s1719_s15 = smov %s1141_s16 }
 0x230   : > { %s1720_s16 = smov %s1145_s17  ;;  %s1721_s17 = smov %s1226_s24 }
 0x231   : > { %s1722_s18 = smov %s1215_s21  ;;  %16 = sbr.rel (!%p14_p9) target bundleno = 3 (0x3), region = 82 }
 0x236   :  { %948 = vsyncpa [#allocation4], 1 }
 0x237   :  { %950 = vsyncpa [#allocation4 + $0x1], 1 }

</bundles_post_ra>
